<compile_context>
chip_gen: v7x
topology: tpu7x:2x2x1
jax: 0.10.0
libtpu: 0.0.40
codegen_flags: <defaults>
</compile_context>

<pallas_src>
import numpy as np
import jax
import jax.numpy as jnp
from jax.experimental import pallas as pl
from jax.experimental.pallas import tpu as pltpu


def _recombine_planes(r_f32, b_pad):
    """(4*B_pad, T) f32 plane results (each value 0..255) -> (B_pad, T) int32."""
    p0 = r_f32[0 * b_pad:1 * b_pad].astype(jnp.int32)
    p1 = r_f32[1 * b_pad:2 * b_pad].astype(jnp.int32)
    p2 = r_f32[2 * b_pad:3 * b_pad].astype(jnp.int32)
    p3 = r_f32[3 * b_pad:4 * b_pad].astype(jnp.int32)
    # shift+or (not *65536+): single-slot VPU ops; int32 wraparound on the top
    # byte reproduces the two's-complement bit pattern exactly.
    return (p3 << 24) | (p2 << 16) | (p1 << 8) | p0


def _permute_kernel_oneshot(xp_ref, p_ref, o_ref):
    """grid = (n_j,): full-S contraction per output tile, direct writeback."""
    b_pad = o_ref.shape[0]
    r = jnp.dot(xp_ref[...], p_ref[...], preferred_element_type=jnp.float32)
    o_ref[...] = _recombine_planes(r, b_pad)


def _permute_kernel_acc(xp_ref, p_ref, o_ref, acc_ref):
    """grid = (n_j, n_k): k chunks the contraction; xp stays fully resident."""
    k = pl.program_id(1)
    tk = p_ref.shape[0]

    @pl.when(k == 0)
    def _():
        acc_ref[...] = jnp.zeros_like(acc_ref)

    start = pl.multiple_of(k * tk, tk)          # lane-aligned slice of resident LHS
    xk = xp_ref[:, pl.ds(start, tk)]            # (4*B_pad, tk) bf16
    acc_ref[...] += jnp.dot(xk, p_ref[...], preferred_element_type=jnp.float32)

    @pl.when(k == pl.num_programs(1) - 1)
    def _():
        b_pad = o_ref.shape[0]
        o_ref[...] = _recombine_planes(acc_ref[...], b_pad)


def _choose_tiles(S):
    """Pick (output tile TS, contraction chunk TK); TS and TK are decoupled."""
    # Single-shot fast path for small problems: one full-extent tile, grid (1,).
    if S <= 512:
        return S, S
    # Output tile: lane-dense and wide (unmasked vst), but keep >= 2 j-steps so
    # both v7x TensorCores get work.
    ts = S
    for t in (2048, 1024, 512, 256, 128):
        if S % t == 0 and S // t >= 2:
            ts = t
            break
    # Contraction chunk: full S while modest (one dot, no accumulator); for
    # large S cap at 512/256 (multiples of the 256-deep MXU) to bound the
    # double-buffered (TK, TS) permutation-tile VMEM.
    if S <= 2048:
        tk = S
    else:
        tk = S
        for t in (512, 256, 128):
            if S % t == 0:
                tk = t
                break
    # TODO(synk): S > ~4K that is not a multiple of 128 falls back to a single
    # full-extent block; tile B / pad S if such shapes ever matter.
    return ts, tk


def apply_permutation(x, perm_mat):
    """out[:, j] = x[:, idx[j]] where perm_mat[r, j] = (idx[j] == r), bf16."""
    x = jnp.asarray(x, dtype=jnp.int32)
    B, S = x.shape
    assert perm_mat.shape == (S, S)

    ts, tk = _choose_tiles(S)
    n_j, n_k = S // ts, S // tk

    # Pad batch to a sublane multiple so int32 output stores are unmasked.
    B_pad = ((B + 7) // 8) * 8
    x_p = x if B_pad == B else jnp.pad(x, ((0, B_pad - B), (0, 0)))

    # Split into four 8-bit planes (each 0..255, exact in bf16) stacked along
    # rows -> one stacked MXU matmul instead of several per-plane matmuls.
    planes = jnp.concatenate(
        [x_p & 0xFF, (x_p >> 8) & 0xFF, (x_p >> 16) & 0xFF, (x_p >> 24) & 0xFF],
        axis=0,
    ).astype(jnp.bfloat16)                                   # (4*B_pad, S)

    if n_k == 1:
        out = pl.pallas_call(
            _permute_kernel_oneshot,
            out_shape=jax.ShapeDtypeStruct((B_pad, S), jnp.int32),
            grid_spec=pltpu.PrefetchScalarGridSpec(
                num_scalar_prefetch=0,
                grid=(n_j,),
                in_specs=[
                    # LHS fully resident (constant block index -> one DMA).
                    pl.BlockSpec((4 * B_pad, S), lambda j: (0, 0)),
                    # Precomputed permutation matrix, tiled over output cols.
                    pl.BlockSpec((S, ts), lambda j: (0, j)),
                ],
                out_specs=pl.BlockSpec((B_pad, ts), lambda j: (0, j)),
            ),
            compiler_params=pltpu.CompilerParams(
                dimension_semantics=("parallel",)),
        )(planes, perm_mat)
    else:
        out = pl.pallas_call(
            _permute_kernel_acc,
            out_shape=jax.ShapeDtypeStruct((B_pad, S), jnp.int32),
            grid_spec=pltpu.PrefetchScalarGridSpec(
                num_scalar_prefetch=0,
                grid=(n_j, n_k),
                in_specs=[
                    pl.BlockSpec((4 * B_pad, S), lambda j, k: (0, 0)),
                    pl.BlockSpec((tk, ts), lambda j, k: (k, j)),
                ],
                out_specs=pl.BlockSpec((B_pad, ts), lambda j, k: (0, j)),
                scratch_shapes=[pltpu.VMEM((4 * B_pad, ts), jnp.float32)],
            ),
            compiler_params=pltpu.CompilerParams(
                dimension_semantics=("parallel", "arbitrary")),
        )(planes, perm_mat)

    return out[:B] if B_pad != B else out


class RandomPermuter:
    """JAX/Pallas equivalent of taming's Random permuter module."""

    def __init__(self, H, W):
        S = H * W
        # Deterministic, matches np.random.RandomState(1).permutation in torch.
        indices = np.random.RandomState(1).permutation(S)
        self.forward_shuffle_idx = jnp.asarray(indices, dtype=jnp.int32)
        self.backward_shuffle_idx = jnp.asarray(np.argsort(indices), dtype=jnp.int32)
        # Static permutation one-hot, precomputed once: P[idx[j], j] = 1, so
        # x @ P == x[:, idx].  Backward matrix is simply the transpose.
        fwd = np.zeros((S, S), dtype=np.float32)
        fwd[indices, np.arange(S)] = 1.0
        self.forward_perm_mat = jnp.asarray(fwd, dtype=jnp.bfloat16)
        self.backward_perm_mat = jnp.asarray(fwd.T, dtype=jnp.bfloat16)

    def __call__(self, x, reverse=False):
        pm = self.backward_perm_mat if reverse else self.forward_perm_mat
        return apply_permutation(x, pm)


if __name__ == "__main__":
    H, W = 16, 16            # S = H*W = 256
    B = 4                    # padded to 8 sublanes inside the wrapper
    S = H * W

    key = jax.random.PRNGKey(0)
    k1, k2 = jax.random.split(key)
    x = jax.random.randint(k1, (B, S), 0, 16384, dtype=jnp.int32)

    perm = RandomPermuter(H, W)

    y = jax.block_until_ready(perm(x))                           # forward shuffle
    x_roundtrip = jax.block_until_ready(perm(y, reverse=True))   # backward shuffle

    # Reference check against the exact PyTorch semantics x[:, idx].
    idx_np = np.asarray(perm.forward_shuffle_idx)
    ref_fwd = np.asarray(x)[:, idx_np]
    assert np.array_equal(np.asarray(y), ref_fwd), "forward permutation mismatch"
    assert np.array_equal(np.asarray(x_roundtrip), np.asarray(x)), "reverse permutation mismatch"

    # Full int32 range: proves the 4x8-bit bf16 plane split is bit-exact.
    x_big = jax.random.randint(k2, (B, S), 0, 2**31 - 1, dtype=jnp.int32)
    y_big = jax.block_until_ready(perm(x_big))
    assert np.array_equal(np.asarray(y_big), np.asarray(x_big)[:, idx_np]), \
        "large-value permutation mismatch"

    print("KERNEL_OK")
</pallas_src>

<mosaic_0001>
module attributes {stable_mosaic.version = 11 : i64} {
  func.func @_permute_kernel_oneshot(%arg0: i32, %arg1: memref<32x256xbf16, #tpu.memory_space<vmem>>, %arg2: memref<256x256xbf16, #tpu.memory_space<vmem>>, %arg3: memref<8x256xi32, #tpu.memory_space<vmem>>) attributes {dimension_semantics = [#tpu.dimension_semantics<parallel>], iteration_bounds = array<i64: 1>, scalar_prefetch = 0 : i64, scratch_operands = 0 : i64, tpu.core_type = #tpu.core_type<tc>, window_params = [{pipeline_mode = #tpu.pipeline_mode<synchronous>, transform_indices = @transform_0, window_bounds = array<i64: 32, 256>}, {transform_indices = @transform_1, window_bounds = array<i64: 256, 256>}, {transform_indices = @transform_2, window_bounds = array<i64: 8, 256>}]} {
    %c0 = arith.constant 0 : index
    %c0_0 = arith.constant 0 : index
    %0 = vector.load %arg1[%c0, %c0_0] : memref<32x256xbf16, #tpu.memory_space<vmem>>, vector<32x256xbf16>
    %c0_1 = arith.constant 0 : index
    %c0_2 = arith.constant 0 : index
    %1 = vector.load %arg2[%c0_1, %c0_2] : memref<256x256xbf16, #tpu.memory_space<vmem>>, vector<256x256xbf16>
    %cst = arith.constant dense<0.000000e+00> : vector<32x256xf32>
    %2 = tpu.matmul %0, %1, %cst {dimension_numbers = #tpu.dot_dimension_numbers<[1], [0], [0], [1], [0, 0, 1, 1], [], []>} : vector<32x256xbf16>, vector<256x256xbf16>, vector<32x256xf32> -> vector<32x256xf32>
    %3 = vector.extract_strided_slice %2 {offsets = [0, 0], sizes = [8, 256], strides = [1, 1]} : vector<32x256xf32> to vector<8x256xf32>
    %4 = arith.fptosi %3 : vector<8x256xf32> to vector<8x256xi32>
    %5 = vector.extract_strided_slice %2 {offsets = [8, 0], sizes = [8, 256], strides = [1, 1]} : vector<32x256xf32> to vector<8x256xf32>
    %6 = arith.fptosi %5 : vector<8x256xf32> to vector<8x256xi32>
    %7 = vector.extract_strided_slice %2 {offsets = [16, 0], sizes = [8, 256], strides = [1, 1]} : vector<32x256xf32> to vector<8x256xf32>
    %8 = arith.fptosi %7 : vector<8x256xf32> to vector<8x256xi32>
    %9 = vector.extract_strided_slice %2 {offsets = [24, 0], sizes = [8, 256], strides = [1, 1]} : vector<32x256xf32> to vector<8x256xf32>
    %10 = arith.fptosi %9 : vector<8x256xf32> to vector<8x256xi32>
    %c24_i32 = arith.constant 24 : i32
    %11 = vector.broadcast %c24_i32 : i32 to vector<8x256xi32>
    %12 = arith.shli %10, %11 : vector<8x256xi32>
    %c16_i32 = arith.constant 16 : i32
    %13 = vector.broadcast %c16_i32 : i32 to vector<8x256xi32>
    %14 = arith.shli %8, %13 : vector<8x256xi32>
    %15 = arith.ori %12, %14 : vector<8x256xi32>
    %c8_i32 = arith.constant 8 : i32
    %16 = vector.broadcast %c8_i32 : i32 to vector<8x256xi32>
    %17 = arith.shli %6, %16 : vector<8x256xi32>
    %18 = arith.ori %15, %17 : vector<8x256xi32>
    %19 = arith.ori %18, %4 : vector<8x256xi32>
    %c0_3 = arith.constant 0 : index
    %c0_4 = arith.constant 0 : index
    %20 = vector.load %arg3[%c0_3, %c0_4] : memref<8x256xi32, #tpu.memory_space<vmem>>, vector<8x256xi32>
    tpu.vector_store %arg3[%c0_3, %c0_4], %19 {strides = array<i32>} : memref<8x256xi32, #tpu.memory_space<vmem>>, vector<8x256xi32>,
    return
  }
  func.func @transform_0(%arg0: i32) -> (i32, i32) {
    %c0_i32 = arith.constant 0 : i32
    %c0_i32_0 = arith.constant 0 : i32
    %c0_i32_1 = arith.constant 0 : i32
    return %c0_i32, %c0_i32_0 : i32, i32
  }
  func.func @transform_1(%arg0: i32) -> (i32, i32) {
    %c0_i32 = arith.constant 0 : i32
    %c0_i32_0 = arith.constant 0 : i32
    return %c0_i32, %arg0 : i32, i32
  }
  func.func @transform_2(%arg0: i32) -> (i32, i32) {
    %c0_i32 = arith.constant 0 : i32
    %c0_i32_0 = arith.constant 0 : i32
    return %c0_i32, %arg0 : i32, i32
  }
}

</mosaic_0001>

<bundles_post_ra>
// kernel: tpu_custom_call.1
= control target key start
LH: loop header
LB: loop body
LE: loop exit
PB: predicated region body
PF: predicated region fallthrough
CT: control target
= control target key end

     0   :  { %7 = vsyncpa [#allocation3], 0  ;;  %s618_s0 = inlined_call_operand.hbm [shape: bf16[32,256], index: 0, kind: input, shape index: {}]   ;;  %s619_s1 = inlined_call_operand.hbm [shape: bf16[256,256], index: 1, kind: input, shape index: {}]   ;;  %s620_s2 = inlined_call_operand.hbm [shape: s32[8,256], index: 2, kind: output, shape index: {}]  }
   0x1   :  { %8 = vsyncpa [#allocation6], 0 }
   0x2   :  { %9 = vsyncpa [#allocation4], 0  ;;  %s562_s9 = smov [#allocation2]   ;;  %s490_s13 = scalar_lea.hbm %s618_s0, 512 }
   0x3   :  { %s15_s10 = sshll.u32 %s562_s9, 4  ;;  %p491_p0 = scmp.ne.s32.totalorder %s618_s0, %s490_s13  ;;  %s16_s10 = int_to_ptr.vmem [resolvable:$true] %s15_s10 }
   0x4   :  { %p494_p1 = scmp.lt.u32.totalorder %s490_s13, %s618_s0 }
   0x6   :  { %p496_p2 = pnand %p494_p1, %p491_p0 }
   0x8   :  { %499 = shalt.err (!%p496_p2)
}
   0x9   :  { %s500_s18 = scalar_lea.vmem %s16_s10, 512  ;;  %p505_p4 = scmp.lt.s32.totalorder %s16_s10, %s16_s10 }
   0xa   :  { %p501_p3 = scmp.ne.s32.totalorder %s16_s10, %s500_s18  ;;  %p506_p5 = scmp.lt.s32.totalorder %s500_s18, %s500_s18 }
   0xc   :  { %p507_p6 = por %p506_p5, %p505_p4 }
   0xe   :  { %p508_p7 = pnand %p507_p6, %p501_p3 }
  0x10   :  { %511 = shalt.err (!%p508_p7)
}
  0x11   :  { %s563_s19 = smov 128   ;;  %s564_s20 = smov 8  }
  0x12   :  { %21 = dma.hbm_to_vmem [thread:$0]  %s618_s0, 512, %s16_s10, [#allocation3], %s563_s19, %s563_s19, %s564_s20  }
  0x13   :  { %s565_s23 = smov [#allocation5]   ;;  %s512_s27 = scalar_lea.hbm %s619_s1, 4096 }
  0x14   :  { %s27_s24 = sshll.u32 %s565_s23, 4  ;;  %p513_p8 = scmp.ne.s32.totalorder %s619_s1, %s512_s27  ;;  %s28_s24 = int_to_ptr.vmem [resolvable:$true] %s27_s24 }
  0x15   :  { %p516_p9 = scmp.lt.u32.totalorder %s512_s27, %s619_s1 }
  0x17   :  { %p518_p10 = pnand %p516_p9, %p513_p8 }
  0x19   :  { %521 = shalt.err (!%p518_p10)
}
  0x1a   :  { %s522_s4 = scalar_lea.vmem %s28_s24, 4096  ;;  %p527_p12 = scmp.lt.s32.totalorder %s28_s24, %s28_s24 }
  0x1b   :  { %p523_p11 = scmp.ne.s32.totalorder %s28_s24, %s522_s4  ;;  %p528_p13 = scmp.lt.s32.totalorder %s522_s4, %s522_s4 }
  0x1d   :  { %p529_p0 = por %p528_p13, %p527_p12 }
  0x1f   :  { %p530_p1 = pnand %p529_p0, %p523_p11 }
  0x21   :  { %533 = shalt.err (!%p530_p1)
}
  0x22   :  { %33 = dma.hbm_to_vmem [thread:$0]  %s619_s1, 4096, %s28_s24, [#allocation6], %s563_s19, %s563_s19, %s564_s20  }
  0x23   :  { %556 = dma.done.wait [#allocation3], 512  }
  0x24   :  { %557 = vsyncadd [#allocation3], 4294966784 }
  0x25   :  { %558 = dma.done.wait [#allocation6], 4096  }
  0x26   :  { %559 = vsyncadd [#allocation6], 4294963200  ;;  %v436_v0 = vld [vmem:[#allocation5 + $0x4] ss:$8 sps:$4 sm:$0xff]   ;;  %v438_v1 = vld [vmem:[#allocation5] ss:$8 sps:$4 sm:$0xff]  }
  0x27   :  { %256 = vmatprep.subr.bf16.mxu0 %v436_v0  ;;  %383 = vmatprep.subr.bf16.mxu1 %v436_v0  ;;  %v439_v2 = vld [vmem:[#allocation5 + $0x14] ss:$8 sps:$4 sm:$0xff]   ;;  %v441_v3 = vld [vmem:[#allocation5 + $0x10] ss:$8 sps:$4 sm:$0xff]   ;;  %v442_v4 = vld [vmem:[#allocation5 + $0x24] ss:$8 sps:$4 sm:$0xff]  }
  0x28   :  { %257 = vmatpush1.bf16.msra.mxu0 %v438_v1  ;;  %399 = vmatpush1.bf16.msra.mxu1 %v438_v1  ;;  %v444_v5 = vld [vmem:[#allocation5 + $0x20] ss:$8 sps:$4 sm:$0xff]   ;;  %v445_v6 = vld [vmem:[#allocation5 + $0x34] ss:$8 sps:$4 sm:$0xff]   ;;  %v447_v7 = vld [vmem:[#allocation5 + $0x30] ss:$8 sps:$4 sm:$0xff]  }
  0x29   :  { %258 = vmatprep.subr.bf16.mxu0 %v439_v2  ;;  %384 = vmatprep.subr.bf16.mxu1 %v439_v2  ;;  %v448_v8 = vld [vmem:[#allocation5 + $0x44] ss:$8 sps:$4 sm:$0xff]   ;;  %v450_v9 = vld [vmem:[#allocation5 + $0x40] ss:$8 sps:$4 sm:$0xff]   ;;  %v451_v10 = vld [vmem:[#allocation5 + $0x54] ss:$8 sps:$4 sm:$0xff]  }
  0x2a   :  { %v453_v11 = vld [vmem:[#allocation5 + $0x50] ss:$8 sps:$4 sm:$0xff]   ;;  %v454_v12 = vld [vmem:[#allocation5 + $0x64] ss:$8 sps:$4 sm:$0xff]   ;;  %v456_v14 = vld [vmem:[#allocation5 + $0x60] ss:$8 sps:$4 sm:$0xff]  }
  0x2b   :  { %v486_v13 = vld [vmem:[#allocation2 + $0x4] ss:$8 sps:$4 sm:$0xff]   ;;  %v489_v15 = vld [vmem:[#allocation2 + $0x14] ss:$8 sps:$4 sm:$0xff]   ;;  %v459_v17 = vld [vmem:[#allocation5 + $0x70] ss:$8 sps:$4 sm:$0xff]  }
  0x2c   :  { %259 = vmatpush1.bf16.msra.mxu0 %v441_v3  ;;  %400 = vmatpush1.bf16.msra.mxu1 %v441_v3  ;;  %v457_v16 = vld [vmem:[#allocation5 + $0x74] ss:$8 sps:$4 sm:$0xff]   ;;  %v460_v18 = vld [vmem:[#allocation5 + $0x84] ss:$8 sps:$4 sm:$0xff]   ;;  %v462_v19 = vld [vmem:[#allocation5 + $0x80] ss:$8 sps:$4 sm:$0xff]  }
  0x2d   :  { %260 = vmatprep.subr.bf16.mxu0 %v442_v4  ;;  %385 = vmatprep.subr.bf16.mxu1 %v442_v4  ;;  %v463_v20 = vld [vmem:[#allocation5 + $0x94] ss:$8 sps:$4 sm:$0xff]   ;;  %v465_v21 = vld [vmem:[#allocation5 + $0x90] ss:$8 sps:$4 sm:$0xff]   ;;  %v466_v22 = vld [vmem:[#allocation5 + $0xa4] ss:$8 sps:$4 sm:$0xff]  }
  0x2e   :  { %288 = vmatprep.mubr.bf16.mxu0 %v486_v13  ;;  %298 = vmatprep.mubr.bf16.mxu1 %v489_v15  ;;  %v468_v23 = vld [vmem:[#allocation5 + $0xa0] ss:$8 sps:$4 sm:$0xff]   ;;  %v469_v24 = vld [vmem:[#allocation5 + $0xb4] ss:$8 sps:$4 sm:$0xff]   ;;  %v471_v25 = vld [vmem:[#allocation5 + $0xb0] ss:$8 sps:$4 sm:$0xff]  }
  0x2f   :  { %v472_v26 = vld [vmem:[#allocation5 + $0xc4] ss:$8 sps:$4 sm:$0xff]   ;;  %v474_v27 = vld [vmem:[#allocation5 + $0xc0] ss:$8 sps:$4 sm:$0xff]   ;;  %v475_v28 = vld [vmem:[#allocation5 + $0xd4] ss:$8 sps:$4 sm:$0xff]  }
  0x30   :  { %261 = vmatpush1.bf16.msra.mxu0 %v444_v5  ;;  %401 = vmatpush1.bf16.msra.mxu1 %v444_v5  ;;  %v477_v29 = vld [vmem:[#allocation5 + $0xd0] ss:$8 sps:$4 sm:$0xff]   ;;  %v478_v30 = vld [vmem:[#allocation5 + $0xe4] ss:$8 sps:$4 sm:$0xff]   ;;  %v480_v31 = vld [vmem:[#allocation5 + $0xe0] ss:$8 sps:$4 sm:$0xff]  }
  0x31   :  { %262 = vmatprep.subr.bf16.mxu0 %v445_v6  ;;  %386 = vmatprep.subr.bf16.mxu1 %v445_v6  ;;  %v481_v32 = vld [vmem:[#allocation5 + $0xf4] ss:$8 sps:$4 sm:$0xff]   ;;  %v483_v33 = vld [vmem:[#allocation5 + $0xf0] ss:$8 sps:$4 sm:$0xff]   ;;  %v484_v34 = vld [vmem:[#allocation2] ss:$8 sps:$4 sm:$0xff]  }
  0x32   :  { %v487_v35 = vld [vmem:[#allocation2 + $0x10] ss:$8 sps:$4 sm:$0xff]   ;;  %s566_s1 = smov [#allocation7]  }
  0x33   :  { %s337_s6 = sshll.u32 %s566_s1, 4  ;;  %s338_s6 = int_to_ptr.vmem [resolvable:$true] %s337_s6 }
  0x34   :  { %263 = vmatpush1.bf16.msra.mxu0 %v447_v7  ;;  %402 = vmatpush1.bf16.msra.mxu1 %v447_v7  ;;  %s534_s7 = scalar_lea.vmem %s338_s6, 256  ;;  %p539_p3 = scmp.lt.s32.totalorder %s338_s6, %s338_s6 }
  0x35   :  { %264 = vmatprep.subr.bf16.mxu0 %v448_v8  ;;  %387 = vmatprep.subr.bf16.mxu1 %v448_v8  ;;  %p535_p2 = scmp.ne.s32.totalorder %s338_s6, %s534_s7  ;;  %p540_p4 = scmp.lt.s32.totalorder %s534_s7, %s534_s7 }
  0x37   :  { %p541_p5 = por %p540_p4, %p539_p3 }
  0x38   :  { %265 = vmatpush1.bf16.msra.mxu0 %v450_v9  ;;  %403 = vmatpush1.bf16.msra.mxu1 %v450_v9 }
  0x39   :  { %266 = vmatprep.subr.bf16.mxu0 %v451_v10  ;;  %388 = vmatprep.subr.bf16.mxu1 %v451_v10  ;;  %p542_p6 = pnand %p541_p5, %p535_p2 }
  0x3c   :  { %267 = vmatpush1.bf16.msra.mxu0 %v453_v11  ;;  %404 = vmatpush1.bf16.msra.mxu1 %v453_v11 }
  0x3d   :  { %268 = vmatprep.subr.bf16.mxu0 %v454_v12  ;;  %389 = vmatprep.subr.bf16.mxu1 %v454_v12 }
  0x40   :  { %269 = vmatpush1.bf16.msra.mxu0 %v456_v14  ;;  %405 = vmatpush1.bf16.msra.mxu1 %v456_v14 }
  0x41   :  { %270 = vmatprep.subr.bf16.mxu0 %v457_v16  ;;  %390 = vmatprep.subr.bf16.mxu1 %v457_v16 }
  0x44   :  { %271 = vmatpush1.bf16.msra.mxu0 %v459_v17  ;;  %406 = vmatpush1.bf16.msra.mxu1 %v459_v17 }
  0x45   :  { %272 = vmatprep.subr.bf16.mxu0 %v460_v18  ;;  %391 = vmatprep.subr.bf16.mxu1 %v460_v18 }
  0x48   :  { %273 = vmatpush1.bf16.msra.mxu0 %v462_v19  ;;  %407 = vmatpush1.bf16.msra.mxu1 %v462_v19 }
  0x49   :  { %274 = vmatprep.subr.bf16.mxu0 %v463_v20  ;;  %392 = vmatprep.subr.bf16.mxu1 %v463_v20 }
  0x4c   :  { %275 = vmatpush1.bf16.msra.mxu0 %v465_v21  ;;  %408 = vmatpush1.bf16.msra.mxu1 %v465_v21 }
  0x4d   :  { %276 = vmatprep.subr.bf16.mxu0 %v466_v22  ;;  %393 = vmatprep.subr.bf16.mxu1 %v466_v22 }
  0x50   :  { %277 = vmatpush1.bf16.msra.mxu0 %v468_v23  ;;  %409 = vmatpush1.bf16.msra.mxu1 %v468_v23 }
  0x51   :  { %278 = vmatprep.subr.bf16.mxu0 %v469_v24  ;;  %394 = vmatprep.subr.bf16.mxu1 %v469_v24 }
  0x54   :  { %279 = vmatpush1.bf16.msra.mxu0 %v471_v25  ;;  %410 = vmatpush1.bf16.msra.mxu1 %v471_v25 }
  0x55   :  { %280 = vmatprep.subr.bf16.mxu0 %v472_v26  ;;  %395 = vmatprep.subr.bf16.mxu1 %v472_v26 }
  0x58   :  { %281 = vmatpush1.bf16.msra.mxu0 %v474_v27  ;;  %411 = vmatpush1.bf16.msra.mxu1 %v474_v27 }
  0x59   :  { %282 = vmatprep.subr.bf16.mxu0 %v475_v28  ;;  %396 = vmatprep.subr.bf16.mxu1 %v475_v28 }
  0x5c   :  { %283 = vmatpush1.bf16.msra.mxu0 %v477_v29  ;;  %412 = vmatpush1.bf16.msra.mxu1 %v477_v29 }
  0x5d   :  { %284 = vmatprep.subr.bf16.mxu0 %v478_v30  ;;  %397 = vmatprep.subr.bf16.mxu1 %v478_v30 }
  0x60   :  { %285 = vmatpush1.bf16.msra.mxu0 %v480_v31  ;;  %413 = vmatpush1.bf16.msra.mxu1 %v480_v31 }
  0x61   :  { %286 = vmatprep.subr.bf16.mxu0 %v481_v32  ;;  %398 = vmatprep.subr.bf16.mxu1 %v481_v32 }
  0x64   :  { %287 = vmatpush1.bf16.msra.mxu0 %v483_v33  ;;  %414 = vmatpush1.bf16.msra.mxu1 %v483_v33 }
  0x67   :  { %289 = vmatmul.mubr.bf16.vlgmr.msra.gmra.mrb[0].mxu0 %v484_v34  ;;  %299 = vmatmul.mubr.bf16.vlgmr.msra.gmra.mrb[0].mxu1 %v487_v35 }
 0x13a   :  { %v290_v36 = vpop.f32.mrb[0].mxu0  ;;  %v300_v37 = vpop.f32.mrb[0].mxu1 }
 0x13b   :  { %v423_v38 = vtrunc.f32 %v300_v37  ;;  %v292_v39 = vpop.f32.mrb[1].mxu0  ;;  %v302_v40 = vpop.f32.mrb[1].mxu1  ;;  %v415_v56 = vtrunc.f32 %v290_v36 }
 0x13c   :  { %v425_v41 = vtrunc.f32 %v302_v40  ;;  %v294_v42 = vpop.f32.mrb[2].mxu0  ;;  %v304_v43 = vpop.f32.mrb[2].mxu1  ;;  %v417_v59 = vtrunc.f32 %v292_v39 }
 0x13d   :  { %v424_v44 = vcvt.f32.s32 %v423_v38  ;;  %v419_v45 = vtrunc.f32 %v294_v42  ;;  %v427_v46 = vtrunc.f32 %v304_v43  ;;  %v296_v47 = vpop.f32.mrb[3].mxu0  ;;  %v306_v48 = vpop.f32.mrb[3].mxu1  ;;  %v416_v2 = vcvt.f32.s32 %v415_v56 }
 0x13e   :  { %v426_v49 = vcvt.f32.s32 %v425_v41  ;;  %v421_v50 = vtrunc.f32 %v296_v47  ;;  %v429_v51 = vtrunc.f32 %v306_v48  ;;  %v418_v4 = vcvt.f32.s32 %v417_v59 }
 0x13f   :  { %v420_v52 = vcvt.f32.s32 %v419_v45  ;;  %v428_v53 = vcvt.f32.s32 %v427_v46  ;;  %v319_v57 = vshll.u32 %v424_v44, 16 }
 0x140   :  { %v422_v54 = vcvt.f32.s32 %v421_v50  ;;  %v430_v55 = vcvt.f32.s32 %v429_v51  ;;  %v320_v60 = vshll.u32 %v426_v49, 16 }
 0x141   :  { %v317_v58 = vshll.u32 %v428_v53, 24  ;;  %v323_v62 = vshll.u32 %v420_v52, 8 }
 0x142   :  { %v318_v61 = vshll.u32 %v430_v55, 24  ;;  %v324_v0 = vshll.u32 %v422_v54, 8 }
 0x143   :  { %v321_v63 = vor.u32 %v319_v57, %v317_v58 }
 0x144   :  { %v322_v1 = vor.u32 %v320_v60, %v318_v61 }
 0x145   :  { %v325_v3 = vor.u32 %v323_v62, %v321_v63 }
 0x146   :  { %v326_v5 = vor.u32 %v324_v0, %v322_v1 }
 0x147   :  { %v327_v6 = vor.u32 %v416_v2, %v325_v3 }
 0x148   :  { %v328_v7 = vor.u32 %v418_v4, %v326_v5 }
 0x149   :  { %329 = vst [vmem:[#allocation7] sm:$0xff] %v327_v6 }
 0x14a   :  { %330 = vst [vmem:[#allocation7 + $0x8] sm:$0xff] %v328_v7 }
 0x14b   :  { %545 = shalt.err (!%p542_p6)
}
 0x14c   :  { %s546_s10 = scalar_lea.hbm %s620_s2, 256 }
 0x14d   :  { %p547_p7 = scmp.ne.s32.totalorder %s620_s2, %s546_s10  ;;  %p550_p8 = scmp.lt.u32.totalorder %s546_s10, %s620_s2 }
 0x14f   :  { %p552_p9 = pnand %p550_p8, %p547_p7 }
 0x151   :  { %555 = shalt.err (!%p552_p9)
}
 0x152   :  { %340 = dma.vmem_to_hbm [thread:$0]  %s338_s6, 256, %s620_s2, [#allocation4]  }
 0x153   :  { %560 = dma.done.wait [#allocation4], 256  }
 0x154   :  { %561 = vsyncadd [#allocation4], 4294967040 }
 0x155   :  { %344 = vsyncpa [#allocation3], 1 }
 0x156   :  { %345 = vsyncpa [#allocation6], 1 }
 0x157   :  { %346 = vsyncpa [#allocation4], 1 }

</bundles_post_ra>
